<compile_context>
chip_gen: v5e
topology: v5e:2x2
jax: 0.10.0
libtpu: 0.0.40
codegen_flags: <defaults>
</compile_context>

<pallas_src>
import functools

import jax
import jax.numpy as jnp
from jax.experimental import pallas as pl
from jax.experimental.pallas import tpu as pltpu


def _mlp_kernel(x_ref, w0_ref, b0_ref, w1_ref, b1_ref, w2_ref, b2_ref,
                wr_ref, br_ref, o_ref, *, reduce_regressor):
    cdt = w0_ref.dtype  # MXU operand dtype (bf16 fast path; f32 also works)

    # stem: Linear + ReLU (x cast in-kernel; f32 accumulation, f32 VPU epilogue)
    h = jnp.dot(x_ref[...].astype(cdt), w0_ref[...],
                preferred_element_type=jnp.float32)
    h = jnp.maximum(h + b0_ref[...], 0.0)
    # hidden layer 1: Linear + ReLU
    h = jnp.dot(h.astype(cdt), w1_ref[...], preferred_element_type=jnp.float32)
    h = jnp.maximum(h + b1_ref[...], 0.0)
    # hidden layer 2: Linear + ReLU
    h = jnp.dot(h.astype(cdt), w2_ref[...], preferred_element_type=jnp.float32)
    h = jnp.maximum(h + b2_ref[...], 0.0)
    # dropout -> identity (eval mode)
    if reduce_regressor:
        # n_output == 1: VPU multiply + XLU lane-sum instead of an N=1 matmul.
        out = jnp.sum(h * wr_ref[...], axis=-1, keepdims=True) + br_ref[...]
    else:
        # n_output > 1: small f32 matmul (matches the f32 reference numerics).
        out = jnp.dot(h, wr_ref[...], preferred_element_type=jnp.float32) + br_ref[...]
    o_ref[...] = out.astype(o_ref.dtype)


def _round_up(x, m):
    return ((x + m - 1) // m) * m


def _tpu_topology():
    """(tensorcores per chip, physical VMEM bytes) with conservative fallbacks."""
    num_tcs = 1
    vmem = 64 * 1024 * 1024  # v7x has the smallest VMEM; safe default
    try:
        info = pltpu.get_tpu_info()
        for name in ("num_cores", "tensor_cores_per_chip", "cores_per_chip",
                     "num_tensorcores"):
            v = getattr(info, name, None)
            if v:
                num_tcs = int(v)
                break
        v = getattr(info, "vmem_capacity_bytes", None)
        if v:
            vmem = int(v)
    except Exception:
        pass
    return max(num_tcs, 1), vmem


def _choose_tile_b(B, num_tcs):
    """Batch tile: generation-aware.

    Multi-TC chips (v7x): >=2 "parallel" grid steps once B >= 256 so the grid
    shards across TensorCores (MXU M-fill is still fine at 128-512 rows).
    Single-TC chips (v5e/v6e): the single biggest tile wins — fewer grid steps,
    fewer per-step pipeline overheads; the working set tile_b*H*4 is tiny.
    """
    B8 = max(8, _round_up(B, 8))  # sublane alignment (8 rows f32)
    if num_tcs >= 2 and B8 >= 256:
        for t in (512, 256, 128):
            if pl.cdiv(B8, t) >= 2:
                return t
        return 128
    return min(B8, 1024)


def ranknet_forward(x, params, *, tile_b=None):
    """Run the Net forward pass as a single fused Pallas kernel.

    x: (B, n_feature) float32
    params: dict with w0,b0,w1,b1,w2,b2,wr,br (weights (in, out), biases (1, out))
    """
    w0, b0 = params["w0"], params["b0"]
    w1, b1 = params["w1"], params["b1"]
    w2, b2 = params["w2"], params["b2"]
    wr, br = params["wr"], params["br"]

    B, F = x.shape
    H = w0.shape[1]
    O = wr.shape[1]

    num_tcs, vmem_phys = _tpu_topology()
    if tile_b is None:
        tile_b = _choose_tile_b(B, num_tcs)

    # Pad batch to a whole number of tiles (aligned (8,128) tiles, keeps the
    # parallel grid for non-divisible B); padded rows are sliced off at the end.
    num_steps = pl.cdiv(max(B, 8), tile_b)
    Bp = num_steps * tile_b
    if Bp != B:
        x = jnp.pad(x, ((0, Bp - B), (0, 0)))

    # Biases stay f32 (VPU epilogue); matmul weights are whatever dtype they
    # were stored in (bf16 by default from init_params).
    b0, b1, b2, br = (b.astype(jnp.float32) for b in (b0, b1, b2, br))

    reduce_regressor = (O == 1)
    if reduce_regressor:
        wr_in = wr.astype(jnp.float32).T                       # (1, H) row, f32
        wr_shape = (1, H)
    else:
        wr_in = wr.astype(jnp.float32)                         # (H, O) f32
        wr_shape = (H, O)

    # Grid-invariant weights/biases: full arrays resident in VMEM. When H is
    # scaled up, single-buffer them (constant index_maps never re-fetch) so two
    # HxH weights don't blow v7x's 64 MiB VMEM.
    single_buffer = H >= 1024

    def full(shape):
        kwargs = {}
        if single_buffer:
            kwargs["pipeline_mode"] = pl.Buffered(1)
        return pl.BlockSpec(shape, lambda i: tuple(0 for _ in shape), **kwargs)

    # VMEM budget from the actual footprint (no artificial floor); ceiling
    # <= 48 MiB keeps headroom under v7x's 64 MiB physical VMEM.
    wbytes = sum(int(a.size) * a.dtype.itemsize
                 for a in (w0, b0, w1, b1, w2, b2, wr_in, br))
    weight_copies = 1 if single_buffer else 2
    est = (2 * (tile_b * F * x.dtype.itemsize + tile_b * O * 4)
           + weight_copies * wbytes + 8 * tile_b * H * 4)
    vmem_limit = int(min(max(2 * est, 8 * 1024 * 1024),
                         min(48 * 1024 * 1024, vmem_phys)))

    # Advisory cost so XLA can schedule/overlap this call inside larger graphs.
    flops = 2 * Bp * (F * H + 2 * H * H + H * O)
    bytes_accessed = Bp * F * x.dtype.itemsize + wbytes + Bp * O * 4
    cost = pl.CostEstimate(flops=flops, transcendentals=0,
                           bytes_accessed=bytes_accessed)

    out = pl.pallas_call(
        functools.partial(_mlp_kernel, reduce_regressor=reduce_regressor),
        out_shape=jax.ShapeDtypeStruct((Bp, O), jnp.float32),
        grid_spec=pltpu.PrefetchScalarGridSpec(
            num_scalar_prefetch=0,
            grid=(num_steps,),
            in_specs=[
                pl.BlockSpec((tile_b, F), lambda i: (i, 0)),   # x tile (batch)
                full((F, H)), full((1, H)),                    # stem
                full((H, H)), full((1, H)),                    # hidden 1
                full((H, H)), full((1, H)),                    # hidden 2
                full(wr_shape), full((1, O)),                  # regressor
            ],
            out_specs=pl.BlockSpec((tile_b, O), lambda i: (i, 0)),
        ),
        compiler_params=pltpu.CompilerParams(
            dimension_semantics=("parallel",),
            vmem_limit_bytes=vmem_limit),
        cost_estimate=cost,
    )(x, w0, b0, w1, b1, w2, b2, wr_in, br)
    return out[:B]


def init_params(key, n_feature, n_hidden, n_output, weight_dtype=jnp.bfloat16):
    """Matches Net.init_weights: W ~ U(-1/sqrt(in), 1/sqrt(in)), b = 0.

    Matmul weights are stored in `weight_dtype` (bf16 fast path on the MXU);
    biases stay f32.
    """
    ks = jax.random.split(key, 4)

    def linear(k, fan_in, fan_out):
        y = 1.0 / jnp.sqrt(jnp.float32(fan_in))
        w = jax.random.uniform(k, (fan_in, fan_out), jnp.float32, -y, y)
        b = jnp.zeros((1, fan_out), jnp.float32)
        return w.astype(weight_dtype), b

    w0, b0 = linear(ks[0], n_feature, n_hidden)
    w1, b1 = linear(ks[1], n_hidden, n_hidden)
    w2, b2 = linear(ks[2], n_hidden, n_hidden)
    wr, br = linear(ks[3], n_hidden, n_output)
    return dict(w0=w0, b0=b0, w1=w1, b1=b1, w2=w2, b2=b2, wr=wr, br=br)


def reference_forward(x, p, *, matmul_dtype=jnp.bfloat16):
    """Pure-JAX reference. matmul_dtype=bf16 mirrors the kernel's numerics
    (bf16 MXU operands, f32 accumulation); f32 gives the exact PyTorch math.
    The regressor is always computed in f32, matching the kernel."""
    def lin(h, w, b):
        return jnp.dot(h.astype(matmul_dtype), w.astype(matmul_dtype),
                       preferred_element_type=jnp.float32) + b.astype(jnp.float32)

    h = jnp.maximum(lin(x, p["w0"], p["b0"]), 0.0)
    h = jnp.maximum(lin(h, p["w1"], p["b1"]), 0.0)
    h = jnp.maximum(lin(h, p["w2"], p["b2"]), 0.0)
    return (jnp.dot(h, p["wr"].astype(jnp.float32),
                    preferred_element_type=jnp.float32)
            + p["br"].astype(jnp.float32))


if __name__ == "__main__":
    # Small shapes consistent with Net(n_feature, n_layers=2, n_hidden, n_output=1).
    # (Module default n_hidden=300 also works — full-dim blocks are used — but a
    # multiple of 128 is MXU/lane friendly.)
    B, n_feature, n_hidden, n_output = 16, 32, 256, 1

    key = jax.random.PRNGKey(0)
    kx, kp = jax.random.split(key)
    x = jax.random.normal(kx, (B, n_feature), jnp.float32)
    params = init_params(kp, n_feature, n_hidden, n_output)

    out = jax.block_until_ready(ranknet_forward(x, params))
    assert out.shape == (B, n_output)

    # Tight check against a reference with identical mixed-precision numerics.
    ref_mixed = reference_forward(x, params, matmul_dtype=jnp.bfloat16)
    assert jnp.allclose(out, ref_mixed, atol=1e-3, rtol=1e-3), \
        "mismatch vs mixed-precision reference"

    # Loose check against full-f32 math (bounds the bf16 operand error).
    ref_f32 = reference_forward(x, params, matmul_dtype=jnp.float32)
    assert jnp.allclose(out, ref_f32, atol=5e-2, rtol=5e-2), \
        "mismatch vs f32 reference"

    print("KERNEL_OK")
</pallas_src>

<mosaic_0001>
module attributes {stable_mosaic.version = 11 : i64} {
  func.func @_mlp_kernel(%arg0: i32, %arg1: memref<16x32xf32, #tpu.memory_space<vmem>>, %arg2: memref<32x256xbf16, #tpu.memory_space<vmem>>, %arg3: memref<1x256xf32, #tpu.memory_space<vmem>>, %arg4: memref<256x256xbf16, #tpu.memory_space<vmem>>, %arg5: memref<1x256xf32, #tpu.memory_space<vmem>>, %arg6: memref<256x256xbf16, #tpu.memory_space<vmem>>, %arg7: memref<1x256xf32, #tpu.memory_space<vmem>>, %arg8: memref<1x256xf32, #tpu.memory_space<vmem>>, %arg9: memref<1x1xf32, #tpu.memory_space<vmem>>, %arg10: memref<16x1xf32, #tpu.memory_space<vmem>>) attributes {dimension_semantics = [#tpu.dimension_semantics<parallel>], iteration_bounds = array<i64: 1>, scalar_prefetch = 0 : i64, scratch_operands = 0 : i64, tpu.core_type = #tpu.core_type<tc>, window_params = [{transform_indices = @transform_0, window_bounds = array<i64: 16, 32>}, {pipeline_mode = #tpu.pipeline_mode<synchronous>, transform_indices = @transform_1, window_bounds = array<i64: 32, 256>}, {pipeline_mode = #tpu.pipeline_mode<synchronous>, transform_indices = @transform_2, window_bounds = array<i64: 1, 256>}, {pipeline_mode = #tpu.pipeline_mode<synchronous>, transform_indices = @transform_3, window_bounds = array<i64: 256, 256>}, {pipeline_mode = #tpu.pipeline_mode<synchronous>, transform_indices = @transform_4, window_bounds = array<i64: 1, 256>}, {pipeline_mode = #tpu.pipeline_mode<synchronous>, transform_indices = @transform_5, window_bounds = array<i64: 256, 256>}, {pipeline_mode = #tpu.pipeline_mode<synchronous>, transform_indices = @transform_6, window_bounds = array<i64: 1, 256>}, {pipeline_mode = #tpu.pipeline_mode<synchronous>, transform_indices = @transform_7, window_bounds = array<i64: 1, 256>}, {pipeline_mode = #tpu.pipeline_mode<synchronous>, transform_indices = @transform_8, window_bounds = array<i64: 1, 1>}, {transform_indices = @transform_9, window_bounds = array<i64: 16, 1>}]} {
    %c0 = arith.constant 0 : index
    %c0_0 = arith.constant 0 : index
    %0 = vector.load %arg1[%c0, %c0_0] : memref<16x32xf32, #tpu.memory_space<vmem>>, vector<16x32xf32>
    %1 = arith.truncf %0 : vector<16x32xf32> to vector<16x32xbf16>
    %c0_1 = arith.constant 0 : index
    %c0_2 = arith.constant 0 : index
    %2 = vector.load %arg2[%c0_1, %c0_2] : memref<32x256xbf16, #tpu.memory_space<vmem>>, vector<32x256xbf16>
    %cst = arith.constant dense<0.000000e+00> : vector<16x256xf32>
    %3 = tpu.matmul %1, %2, %cst {dimension_numbers = #tpu.dot_dimension_numbers<[1], [0], [0], [1], [0, 0, 1, 1], [], []>} : vector<16x32xbf16>, vector<32x256xbf16>, vector<16x256xf32> -> vector<16x256xf32>
    %c0_3 = arith.constant 0 : index
    %c0_4 = arith.constant 0 : index
    %4 = vector.load %arg3[%c0_3, %c0_4] : memref<1x256xf32, #tpu.memory_space<vmem>>, vector<1x256xf32>
    %5 = vector.broadcast %4 : vector<1x256xf32> to vector<16x256xf32>
    %6 = arith.addf %3, %5 : vector<16x256xf32>
    %cst_5 = arith.constant 0.000000e+00 : f32
    %7 = vector.broadcast %cst_5 : f32 to vector<16x256xf32>
    %8 = arith.maximumf %6, %7 : vector<16x256xf32>
    %9 = arith.truncf %8 : vector<16x256xf32> to vector<16x256xbf16>
    %c0_6 = arith.constant 0 : index
    %c0_7 = arith.constant 0 : index
    %10 = vector.load %arg4[%c0_6, %c0_7] : memref<256x256xbf16, #tpu.memory_space<vmem>>, vector<256x256xbf16>
    %cst_8 = arith.constant dense<0.000000e+00> : vector<16x256xf32>
    %11 = tpu.matmul %9, %10, %cst_8 {dimension_numbers = #tpu.dot_dimension_numbers<[1], [0], [0], [1], [0, 0, 1, 1], [], []>} : vector<16x256xbf16>, vector<256x256xbf16>, vector<16x256xf32> -> vector<16x256xf32>
    %c0_9 = arith.constant 0 : index
    %c0_10 = arith.constant 0 : index
    %12 = vector.load %arg5[%c0_9, %c0_10] : memref<1x256xf32, #tpu.memory_space<vmem>>, vector<1x256xf32>
    %13 = vector.broadcast %12 : vector<1x256xf32> to vector<16x256xf32>
    %14 = arith.addf %11, %13 : vector<16x256xf32>
    %cst_11 = arith.constant 0.000000e+00 : f32
    %15 = vector.broadcast %cst_11 : f32 to vector<16x256xf32>
    %16 = arith.maximumf %14, %15 : vector<16x256xf32>
    %17 = arith.truncf %16 : vector<16x256xf32> to vector<16x256xbf16>
    %c0_12 = arith.constant 0 : index
    %c0_13 = arith.constant 0 : index
    %18 = vector.load %arg6[%c0_12, %c0_13] : memref<256x256xbf16, #tpu.memory_space<vmem>>, vector<256x256xbf16>
    %cst_14 = arith.constant dense<0.000000e+00> : vector<16x256xf32>
    %19 = tpu.matmul %17, %18, %cst_14 {dimension_numbers = #tpu.dot_dimension_numbers<[1], [0], [0], [1], [0, 0, 1, 1], [], []>} : vector<16x256xbf16>, vector<256x256xbf16>, vector<16x256xf32> -> vector<16x256xf32>
    %c0_15 = arith.constant 0 : index
    %c0_16 = arith.constant 0 : index
    %20 = vector.load %arg7[%c0_15, %c0_16] : memref<1x256xf32, #tpu.memory_space<vmem>>, vector<1x256xf32>
    %21 = vector.broadcast %20 : vector<1x256xf32> to vector<16x256xf32>
    %22 = arith.addf %19, %21 : vector<16x256xf32>
    %cst_17 = arith.constant 0.000000e+00 : f32
    %23 = vector.broadcast %cst_17 : f32 to vector<16x256xf32>
    %24 = arith.maximumf %22, %23 : vector<16x256xf32>
    %c0_18 = arith.constant 0 : index
    %c0_19 = arith.constant 0 : index
    %25 = vector.load %arg8[%c0_18, %c0_19] : memref<1x256xf32, #tpu.memory_space<vmem>>, vector<1x256xf32>
    %26 = vector.broadcast %25 : vector<1x256xf32> to vector<16x256xf32>
    %27 = arith.mulf %24, %26 : vector<16x256xf32>
    %cst_20 = arith.constant dense<0.000000e+00> : vector<16xf32>
    %28 = vector.multi_reduction <add>, %27, %cst_20 [1] : vector<16x256xf32> to vector<16xf32>
    %29 = vector.shape_cast %28 : vector<16xf32> to vector<16x1xf32>
    %c0_21 = arith.constant 0 : index
    %c0_22 = arith.constant 0 : index
    %30 = vector.load %arg9[%c0_21, %c0_22] : memref<1x1xf32, #tpu.memory_space<vmem>>, vector<1x1xf32>
    %31 = vector.broadcast %30 : vector<1x1xf32> to vector<16x1xf32>
    %32 = arith.addf %29, %31 : vector<16x1xf32>
    %c0_23 = arith.constant 0 : index
    %c0_24 = arith.constant 0 : index
    %33 = vector.load %arg10[%c0_23, %c0_24] : memref<16x1xf32, #tpu.memory_space<vmem>>, vector<16x1xf32>
    tpu.vector_store %arg10[%c0_23, %c0_24], %32 {strides = array<i32>} : memref<16x1xf32, #tpu.memory_space<vmem>>, vector<16x1xf32>,
    return
  }
  func.func @transform_0(%arg0: i32) -> (i32, i32) {
    %c0_i32 = arith.constant 0 : i32
    %c0_i32_0 = arith.constant 0 : i32
    return %arg0, %c0_i32 : i32, i32
  }
  func.func @transform_1(%arg0: i32) -> (i32, i32) {
    %c0_i32 = arith.constant 0 : i32
    %c0_i32_0 = arith.constant 0 : i32
    %c0_i32_1 = arith.constant 0 : i32
    return %c0_i32, %c0_i32_0 : i32, i32
  }
  func.func @transform_2(%arg0: i32) -> (i32, i32) {
    %c0_i32 = arith.constant 0 : i32
    %c0_i32_0 = arith.constant 0 : i32
    %c0_i32_1 = arith.constant 0 : i32
    return %c0_i32, %c0_i32_0 : i32, i32
  }
  func.func @transform_3(%arg0: i32) -> (i32, i32) {
    %c0_i32 = arith.constant 0 : i32
    %c0_i32_0 = arith.constant 0 : i32
    %c0_i32_1 = arith.constant 0 : i32
    return %c0_i32, %c0_i32_0 : i32, i32
  }
  func.func @transform_4(%arg0: i32) -> (i32, i32) {
    %c0_i32 = arith.constant 0 : i32
    %c0_i32_0 = arith.constant 0 : i32
    %c0_i32_1 = arith.constant 0 : i32
    return %c0_i32, %c0_i32_0 : i32, i32
  }
  func.func @transform_5(%arg0: i32) -> (i32, i32) {
    %c0_i32 = arith.constant 0 : i32
    %c0_i32_0 = arith.constant 0 : i32
    %c0_i32_1 = arith.constant 0 : i32
    return %c0_i32, %c0_i32_0 : i32, i32
  }
  func.func @transform_6(%arg0: i32) -> (i32, i32) {
    %c0_i32 = arith.constant 0 : i32
    %c0_i32_0 = arith.constant 0 : i32
    %c0_i32_1 = arith.constant 0 : i32
    return %c0_i32, %c0_i32_0 : i32, i32
  }
  func.func @transform_7(%arg0: i32) -> (i32, i32) {
    %c0_i32 = arith.constant 0 : i32
    %c0_i32_0 = arith.constant 0 : i32
    %c0_i32_1 = arith.constant 0 : i32
    return %c0_i32, %c0_i32_0 : i32, i32
  }
  func.func @transform_8(%arg0: i32) -> (i32, i32) {
    %c0_i32 = arith.constant 0 : i32
    %c0_i32_0 = arith.constant 0 : i32
    %c0_i32_1 = arith.constant 0 : i32
    return %c0_i32, %c0_i32_0 : i32, i32
  }
  func.func @transform_9(%arg0: i32) -> (i32, i32) {
    %c0_i32 = arith.constant 0 : i32
    %c0_i32_0 = arith.constant 0 : i32
    return %arg0, %c0_i32 : i32, i32
  }
}

</mosaic_0001>

<bundles_post_ra>
// kernel: tpu_custom_call.1
= control target key start
LH: loop header
LB: loop body
LE: loop exit
PB: predicated region body
PF: predicated region fallthrough
CT: control target
= control target key end

     0   :  { %s1261_s0 = inlined_call_operand.hbm [shape: f32[16,32], index: 0, kind: input, shape index: {}]   ;;  %s1262_s1 = inlined_call_operand.hbm [shape: bf16[32,256], index: 1, kind: input, shape index: {}]   ;;  %s1263_s2 = inlined_call_operand.vmem [shape: f32[1,256], index: 2, kind: input, shape index: {}]   ;;  %s1264_s3 = inlined_call_operand.hbm [shape: bf16[256,256], index: 3, kind: input, shape index: {}]   ;;  %s1265_s4 = inlined_call_operand.vmem [shape: f32[1,256], index: 4, kind: input, shape index: {}]   ;;  %s1266_s5 = inlined_call_operand.hbm [shape: bf16[256,256], index: 5, kind: input, shape index: {}]   ;;  %s1267_s6 = inlined_call_operand.vmem [shape: f32[1,256], index: 6, kind: input, shape index: {}]   ;;  %s1268_s7 = inlined_call_operand.vmem [shape: f32[1,256], index: 7, kind: input, shape index: {}]   ;;  %s1269_s8 = inlined_call_operand.<no memory space> [shape: f32[1,1], index: 8, kind: input, shape index: {}]   ;;  %s1270_s9 = inlined_call_operand.vmem [shape: f32[16,1], index: 9, kind: output, shape index: {}]  }
   0x1   :  { %v14_v0 = vstv %s1269_s8 }
   0x2   :  { %15 = vst [vmem:[#allocation2] sm:$0x1] %v14_v0 }
   0x3   :  { %16 = vsyncpa [#allocation4], 0 }
   0x4   :  { %17 = vsyncpa [#allocation6], 0 }
   0x5   :  { %18 = vsyncpa [#allocation9], 0  ;;  %s36_s13 = sshll.u32 %s1262_s1, 4  ;;  %s1170_s14 = smov [#allocation5]   ;;  %s37_s13 = int_to_ptr.hbm [resolvable:$true] %s36_s13 }
   0x6   :  { %s38_s15 = sshll.u32 %s1170_s14, 4  ;;  %s23_s18 = sshll.u32 %s1261_s0, 4  ;;  %s39_s15 = int_to_ptr.vmem [resolvable:$true] %s38_s15  ;;  %s24_s18 = int_to_ptr.hbm [resolvable:$true] %s23_s18 }
   0x7   :  { %s1171_s19 = smov 128   ;;  %s1172_s20 = smov 8  }
   0x8   :  { %44 = dma.hbm_to_vmem [thread:$0]  %s37_s13, 512, %s39_s15, [#allocation6], %s1171_s19, %s1171_s19, %s1172_s20  }
   0x9   :  { %s1173_s8 = smov [#allocation3]   ;;  %s51_s24 = sshll.u32 %s1264_s3, 4  ;;  %s52_s24 = int_to_ptr.hbm [resolvable:$true] %s51_s24 }
   0xa   :  { %s25_s21 = sshll.u32 %s1173_s8, 4  ;;  %s66_s26 = sshll.u32 %s1266_s5, 4  ;;  %s26_s21 = int_to_ptr.vmem [resolvable:$true] %s25_s21  ;;  %s67_s26 = int_to_ptr.hbm [resolvable:$true] %s66_s26 }
   0xb   :  { %31 = dma.hbm_to_vmem [thread:$0]  %s24_s18, 256, %s26_s21, [#allocation4], %s1171_s19, %s1171_s19, %s1172_s20  }
   0xc   :  { %s1174_s27 = smov [#allocation7]   ;;  %s1175_s0 = smov [#allocation8]  }
   0xd   :  { %s53_s28 = sshll.u32 %s1174_s27, 4  ;;  %s68_s29 = sshll.u32 %s1175_s0, 4  ;;  %s54_s28 = int_to_ptr.vmem [resolvable:$true] %s53_s28  ;;  %s69_s29 = int_to_ptr.vmem [resolvable:$true] %s68_s29 }
   0xe   :  { %59 = dma.hbm_to_vmem [thread:$0]  %s52_s24, 4096, %s54_s28, [#allocation6], %s1171_s19, %s1171_s19, %s1172_s20  }
   0xf   :  { %74 = dma.hbm_to_vmem [thread:$0]  %s67_s26, 4096, %s69_s29, [#allocation9], %s1171_s19, %s1171_s19, %s1172_s20  }
  0x10   :  { %1164 = dma.done.wait [#allocation4], 256  }
  0x11   :  { %1165 = vsyncadd [#allocation4], 4294967040 }
  0x12   :  { %1166 = dma.done.wait [#allocation6], 4608  }
  0x13   :  { %1167 = vsyncadd [#allocation6], 4294962688 }
  0x14   :  { %1168 = dma.done.wait [#allocation9], 4096  }
  0x15   :  { %1169 = vsyncadd [#allocation9], 4294963200  ;;  %v729_v1 = vld [vmem:[#allocation5 + $0x10] sm:$0xf]  ;;  %v996_v2 = vld [vmem:[#allocation5 + $0x14] sm:$0xf0] }
  0x16   :  { %v995_v3 = vld [vmem:[#allocation5 + $0x14] sm:$0xf]  ;;  %v730_v4 = vor.u32 %v996_v2, %v729_v1  ;;  %v731_v5 = vld [vmem:[#allocation5 + $0x18] sm:$0xf0]  ;;  %v721_v6 = vld [vmem:[#allocation5] sm:$0xf] }
  0x17   :  { %v994_v7 = vld [vmem:[#allocation5 + $0x4] sm:$0xf0]  ;;  %v734_v8 = vor.u32 %v995_v3, %v731_v5  ;;  %v993_v9 = vld [vmem:[#allocation5 + $0x4] sm:$0xf]  ;;  %v723_v10 = vld [vmem:[#allocation5 + $0x8] sm:$0xf0] }
  0x18   :  { %v98_v11 = vld [vmem:[#allocation3] sm:$0xff]  ;;  %141 = vmatpush.bf16.msra.mxu0 %v730_v4  ;;  %v722_v12 = vor.u32 %v994_v7, %v721_v6  ;;  %v99_v13 = vld [vmem:[#allocation3 + $0x8] sm:$0xff]  ;;  %vm131_vm0 = vcmask 261120   ;;  %v726_v16 = vor.u32 %v993_v9, %v723_v10  ;;  %v787_v28 = vld [vmem:[#allocation7 + $0x60] sm:$0xf]  ;;  %vm709_vm1 = vcmask 7168  }
  0x19   :  { %v795_v14 = vld [vmem:[#allocation7 + $0x70] sm:$0xf]  ;;  %v1012_v15 = vld [vmem:[#allocation7 + $0x74] sm:$0xf0]  ;;  %155 = vmatpush.bf16.msra.mxu1 %v734_v8  ;;  %v1011_v20 = vld [vmem:[#allocation7 + $0x74] sm:$0xf]  ;;  %v100_v25 = vpack.c.bf16 %v99_v13, %v98_v11 }
  0x1a   :  { %v796_v17 = vor.u32 %v1012_v15, %v795_v14  ;;  %v859_v18 = vld [vmem:[#allocation7 + $0xf0] sm:$0xf]  ;;  %v1028_v19 = vld [vmem:[#allocation7 + $0xf4] sm:$0xf0]  ;;  %v797_v22 = vld [vmem:[#allocation7 + $0x78] sm:$0xf0] }
  0x1b   :  { %v860_v21 = vor.u32 %v1028_v19, %v859_v18  ;;  %v1027_v23 = vld [vmem:[#allocation7 + $0xf4] sm:$0xf]  ;;  %v861_v24 = vld [vmem:[#allocation7 + $0xf8] sm:$0xf0]  ;;  %v800_v26 = vor.u32 %v1011_v20, %v797_v22  ;;  %v1010_v29 = vld [vmem:[#allocation7 + $0x64] sm:$0xf0] }
  0x1c   :  { %367 = vmatpush.bf16.msra.mxu2 %v796_v17  ;;  %v864_v27 = vor.u32 %v1027_v23, %v861_v24  ;;  %v851_v30 = vld [vmem:[#allocation7 + $0xe0] sm:$0xf]  ;;  %142 = vmatpush.bf16.msra.mxu0 %v722_v12  ;;  %v788_v31 = vor.u32 %v1010_v29, %v787_v28  ;;  %v1026_v32 = vld [vmem:[#allocation7 + $0xe4] sm:$0xf0]  ;;  %v1009_v33 = vld [vmem:[#allocation7 + $0x64] sm:$0xf] }
  0x1d   :  { %381 = vmatpush.bf16.msra.mxu3 %v860_v21  ;;  %v789_v34 = vld [vmem:[#allocation7 + $0x68] sm:$0xf0]  ;;  %156 = vmatpush.bf16.msra.mxu1 %v726_v16  ;;  %v852_v35 = vor.u32 %v1026_v32, %v851_v30  ;;  %v1025_v37 = vld [vmem:[#allocation7 + $0xe4] sm:$0xf]  ;;  %v779_v39 = vld [vmem:[#allocation7 + $0x50] sm:$0xf] }
  0x1e   :  { %v792_v36 = vor.u32 %v1009_v33, %v789_v34  ;;  %v853_v38 = vld [vmem:[#allocation7 + $0xe8] sm:$0xf0]  ;;  %v1008_v41 = vld [vmem:[#allocation7 + $0x54] sm:$0xf0]  ;;  %v843_v42 = vld [vmem:[#allocation7 + $0xd0] sm:$0xf] }
  0x1f   :  { %v856_v40 = vor.u32 %v1025_v37, %v853_v38  ;;  %v1024_v43 = vld [vmem:[#allocation7 + $0xd4] sm:$0xf0]  ;;  %735 = vmatmul.msk.bf16.vlgmr.msra.gmra.mxu0 %vm131_vm0, %v100_v25  ;;  %v780_v44 = vor.u32 %v1008_v41, %v779_v39  ;;  %v1007_v45 = vld [vmem:[#allocation7 + $0x54] sm:$0xf]  ;;  %v781_v46 = vld [vmem:[#allocation7 + $0x58] sm:$0xf0] }
  0x20   :  { %395 = vmatpush.bf16.msrb.mxu0 %v800_v26  ;;  %368 = vmatpush.bf16.msra.mxu2 %v788_v31  ;;  %v1023_v47 = vld [vmem:[#allocation7 + $0xd4] sm:$0xf]  ;;  %v844_v48 = vor.u32 %v1024_v43, %v843_v42  ;;  %v845_v49 = vld [vmem:[#allocation7 + $0xd8] sm:$0xf0]  ;;  %v771_v50 = vld [vmem:[#allocation7 + $0x40] sm:$0xf]  ;;  %v784_v52 = vor.u32 %v1007_v45, %v781_v46 }
  0x21   :  { %409 = vmatpush.bf16.msrb.mxu1 %v864_v27  ;;  %382 = vmatpush.bf16.msra.mxu3 %v852_v35  ;;  %v1006_v51 = vld [vmem:[#allocation7 + $0x44] sm:$0xf0]  ;;  %v835_v53 = vld [vmem:[#allocation7 + $0xc0] sm:$0xf]  ;;  %v848_v55 = vor.u32 %v1023_v47, %v845_v49  ;;  %v1005_v56 = vld [vmem:[#allocation7 + $0x44] sm:$0xf] }
  0x22   :  { %736 = vmatmul.msk.bf16.vlgmr.msra.gmra.mxu1 %vm131_vm0, %v100_v25  ;;  %v1022_v54 = vld [vmem:[#allocation7 + $0xc4] sm:$0xf0]  ;;  %v773_v57 = vld [vmem:[#allocation7 + $0x48] sm:$0xf0]  ;;  %v772_v58 = vor.u32 %v1006_v51, %v771_v50  ;;  %v1021_v59 = vld [vmem:[#allocation7 + $0xc4] sm:$0xf] }
  0x23   :  { %v837_v60 = vld [vmem:[#allocation7 + $0xc8] sm:$0xf0]  ;;  %v836_v61 = vor.u32 %v1022_v54, %v835_v53  ;;  %v776_v62 = vor.u32 %v1005_v56, %v773_v57  ;;  %v763_v0 = vld [vmem:[#allocation7 + $0x30] sm:$0xf]  ;;  %v1004_v1 = vld [vmem:[#allocation7 + $0x34] sm:$0xf0] }
  0x24   :  { %396 = vmatpush.bf16.msrb.mxu0 %v792_v36  ;;  %369 = vmatpush.bf16.msra.mxu2 %v780_v44  ;;  %v840_v63 = vor.u32 %v1021_v59, %v837_v60  ;;  %v827_v2 = vld [vmem:[#allocation7 + $0xb0] sm:$0xf]  ;;  %v764_v3 = vor.u32 %v1004_v1, %v763_v0  ;;  %v1020_v4 = vld [vmem:[#allocation7 + $0xb4] sm:$0xf0]  ;;  %v1003_v5 = vld [vmem:[#allocation7 + $0x34] sm:$0xf] }
  0x25   :  { %410 = vmatpush.bf16.msrb.mxu1 %v856_v40  ;;  %383 = vmatpush.bf16.msra.mxu3 %v844_v48  ;;  %v765_v6 = vld [vmem:[#allocation7 + $0x38] sm:$0xf0]  ;;  %v828_v7 = vor.u32 %v1020_v4, %v827_v2  ;;  %v1019_v9 = vld [vmem:[#allocation7 + $0xb4] sm:$0xf]  ;;  %v755_v12 = vld [vmem:[#allocation7 + $0x20] sm:$0xf] }
  0x26   :  { %v768_v8 = vor.u32 %v1003_v5, %v765_v6  ;;  %v829_v10 = vld [vmem:[#allocation7 + $0xb8] sm:$0xf0]  ;;  %v1002_v13 = vld [vmem:[#allocation7 + $0x24] sm:$0xf0]  ;;  %v819_v15 = vld [vmem:[#allocation7 + $0xa0] sm:$0xf] }
  0x27   :  { %v832_v11 = vor.u32 %v1019_v9, %v829_v10  ;;  %v756_v14 = vor.u32 %v1002_v13, %v755_v12  ;;  %v1018_v16 = vld [vmem:[#allocation7 + $0xa4] sm:$0xf0]  ;;  %v1001_v17 = vld [vmem:[#allocation7 + $0x24] sm:$0xf]  ;;  %v757_v19 = vld [vmem:[#allocation7 + $0x28] sm:$0xf0] }
  0x28   :  { %397 = vmatpush.bf16.msrb.mxu0 %v784_v52  ;;  %370 = vmatpush.bf16.msra.mxu2 %v772_v58  ;;  %v820_v18 = vor.u32 %v1018_v16, %v819_v15  ;;  %v1017_v20 = vld [vmem:[#allocation7 + $0xa4] sm:$0xf]  ;;  %v821_v21 = vld [vmem:[#allocation7 + $0xa8] sm:$0xf0]  ;;  %v760_v22 = vor.u32 %v1001_v17, %v757_v19  ;;  %v747_v24 = vld [vmem:[#allocation7 + $0x10] sm:$0xf] }
  0x29   :  { %411 = vmatpush.bf16.msrb.mxu1 %v848_v55  ;;  %384 = vmatpush.bf16.msra.mxu3 %v836_v61  ;;  %v824_v23 = vor.u32 %v1017_v20, %v821_v21  ;;  %v1000_v25 = vld [vmem:[#allocation7 + $0x14] sm:$0xf0]  ;;  %v811_v26 = vld [vmem:[#allocation7 + $0x90] sm:$0xf]  ;;  %v999_v29 = vld [vmem:[#allocation7 + $0x14] sm:$0xf] }
  0x2a   :  { %v748_v27 = vor.u32 %v1000_v25, %v747_v24  ;;  %v1016_v28 = vld [vmem:[#allocation7 + $0x94] sm:$0xf0]  ;;  %v749_v30 = vld [vmem:[#allocation7 + $0x18] sm:$0xf0]  ;;  %v1015_v33 = vld [vmem:[#allocation7 + $0x94] sm:$0xf] }
  0x2b   :  { %v812_v31 = vor.u32 %v1016_v28, %v811_v26  ;;  %v752_v32 = vor.u32 %v999_v29, %v749_v30  ;;  %v813_v34 = vld [vmem:[#allocation7 + $0x98] sm:$0xf0]  ;;  %v739_v36 = vld [vmem:[#allocation7] sm:$0xf]  ;;  %v998_v37 = vld [vmem:[#allocation7 + $0x4] sm:$0xf0] }
  0x2c   :  { %398 = vmatpush.bf16.msrb.mxu0 %v776_v62  ;;  %371 = vmatpush.bf16.msra.mxu2 %v764_v3  ;;  %v816_v35 = vor.u32 %v1015_v33, %v813_v34  ;;  %v803_v38 = vld [vmem:[#allocation7 + $0x80] sm:$0xf]  ;;  %v740_v39 = vor.u32 %v998_v37, %v739_v36  ;;  %v1014_v40 = vld [vmem:[#allocation7 + $0x84] sm:$0xf0]  ;;  %v997_v41 = vld [vmem:[#allocation7 + $0x4] sm:$0xf] }
  0x2d   :  { %412 = vmatpush.bf16.msrb.mxu1 %v840_v63  ;;  %385 = vmatpush.bf16.msra.mxu3 %v828_v7  ;;  %v741_v42 = vld [vmem:[#allocation7 + $0x8] sm:$0xf0]  ;;  %v804_v43 = vor.u32 %v1014_v40, %v803_v38  ;;  %v1013_v45 = vld [vmem:[#allocation7 + $0x84] sm:$0xf]  ;;  %v987_v48 = vld [vmem:[#allocation8 + $0xf0] sm:$0xf] }
  0x2e   :  { %v744_v44 = vor.u32 %v997_v41, %v741_v42  ;;  %v805_v46 = vld [vmem:[#allocation7 + $0x88] sm:$0xf0]  ;;  %v1060_v49 = vld [vmem:[#allocation8 + $0xf4] sm:$0xf0]  ;;  %v1059_v50 = vld [vmem:[#allocation8 + $0xf4] sm:$0xf] }
  0x2f   :  { %v808_v47 = vor.u32 %v1013_v45, %v805_v46  ;;  %v988_v51 = vor.u32 %v1060_v49, %v987_v48  ;;  %v989_v52 = vld [vmem:[#allocation8 + $0xf8] sm:$0xf0]  ;;  %v979_v53 = vld [vmem:[#allocation8 + $0xe0] sm:$0xf]  ;;  %v1058_v54 = vld [vmem:[#allocation8 + $0xe4] sm:$0xf0] }
  0x30   :  { %399 = vmatpush.bf16.msrb.mxu0 %v768_v8  ;;  %372 = vmatpush.bf16.msra.mxu2 %v756_v14  ;;  %v992_v55 = vor.u32 %v1059_v50, %v989_v52  ;;  %v1057_v56 = vld [vmem:[#allocation8 + $0xe4] sm:$0xf]  ;;  %v981_v57 = vld [vmem:[#allocation8 + $0xe8] sm:$0xf0]  ;;  %v923_v58 = vld [vmem:[#allocation8 + $0x70] sm:$0xf]  ;;  %v980_v59 = vor.u32 %v1058_v54, %v979_v53 }
  0x31   :  { %413 = vmatpush.bf16.msrb.mxu1 %v832_v11  ;;  %386 = vmatpush.bf16.msra.mxu3 %v820_v18  ;;  %v1044_v60 = vld [vmem:[#allocation8 + $0x74] sm:$0xf0]  ;;  %v1043_v61 = vld [vmem:[#allocation8 + $0x74] sm:$0xf]  ;;  %v925_v62 = vld [vmem:[#allocation8 + $0x78] sm:$0xf0]  ;;  %v984_v63 = vor.u32 %v1057_v56, %v981_v57 }
  0x32   :  { %v924_v0 = vor.u32 %v1044_v60, %v923_v58  ;;  %v928_v1 = vor.u32 %v1043_v61, %v925_v62  ;;  %v971_v2 = vld [vmem:[#allocation8 + $0xd0] sm:$0xf]  ;;  %v1056_v3 = vld [vmem:[#allocation8 + $0xd4] sm:$0xf0]  ;;  %v1055_v4 = vld [vmem:[#allocation8 + $0xd4] sm:$0xf] }
  0x33   :  { %v973_v5 = vld [vmem:[#allocation8 + $0xd8] sm:$0xf0]  ;;  %v915_v6 = vld [vmem:[#allocation8 + $0x60] sm:$0xf]  ;;  %v1042_v7 = vld [vmem:[#allocation8 + $0x64] sm:$0xf0]  ;;  %v972_v11 = vor.u32 %v1056_v3, %v971_v2 }
  0x34   :  { %400 = vmatpush.bf16.msrb.mxu0 %v760_v22  ;;  %373 = vmatpush.bf16.msra.mxu2 %v748_v27  ;;  %v916_v8 = vor.u32 %v1042_v7, %v915_v6  ;;  %v1041_v9 = vld [vmem:[#allocation8 + $0x64] sm:$0xf]  ;;  %v917_v10 = vld [vmem:[#allocation8 + $0x68] sm:$0xf0]  ;;  %v976_v13 = vor.u32 %v1055_v4, %v973_v5  ;;  %v963_v14 = vld [vmem:[#allocation8 + $0xc0] sm:$0xf] }
  0x35   :  { %414 = vmatpush.bf16.msrb.mxu1 %v824_v23  ;;  %387 = vmatpush.bf16.msra.mxu3 %v812_v31  ;;  %v920_v12 = vor.u32 %v1041_v9, %v917_v10  ;;  %v1054_v15 = vld [vmem:[#allocation8 + $0xc4] sm:$0xf0]  ;;  %v1053_v16 = vld [vmem:[#allocation8 + $0xc4] sm:$0xf]  ;;  %v965_v17 = vld [vmem:[#allocation8 + $0xc8] sm:$0xf0] }
  0x36   :  { %v964_v18 = vor.u32 %v1054_v15, %v963_v14  ;;  %v968_v19 = vor.u32 %v1053_v16, %v965_v17  ;;  %v105_v20 = vld [vmem:[%s1263_s2] sm:$0x3]  ;;  %v1040_v38 = vld [vmem:[#allocation8 + $0x54] sm:$0xf0]  ;;  %v909_v41 = vld [vmem:[#allocation8 + $0x58] sm:$0xf0] }
  0x37   :  { %v107_v23 = vperm.slane %v105_v20, 0  ;;  %v108_v24 = vperm.slane %v105_v20, 1  ;;  %v907_v37 = vld [vmem:[#allocation8 + $0x50] sm:$0xf]  ;;  %v1051_v45 = vld [vmem:[#allocation8 + $0xb4] sm:$0xf] }
  0x38   :  { %401 = vmatpush.bf16.msrb.mxu0 %v752_v32  ;;  %374 = vmatpush.bf16.msra.mxu2 %v740_v39  ;;  %v1039_v39 = vld [vmem:[#allocation8 + $0x54] sm:$0xf]  ;;  %v908_v40 = vor.u32 %v1040_v38, %v907_v37  ;;  %v899_v49 = vld [vmem:[#allocation8 + $0x40] sm:$0xf]  ;;  %v1038_v50 = vld [vmem:[#allocation8 + $0x44] sm:$0xf0] }
  0x39   :  { %415 = vmatpush.bf16.msrb.mxu1 %v816_v35  ;;  %388 = vmatpush.bf16.msra.mxu3 %v804_v43  ;;  %v912_v42 = vor.u32 %v1039_v39, %v909_v41  ;;  %v955_v43 = vld [vmem:[#allocation8 + $0xb0] sm:$0xf]  ;;  %v900_v52 = vor.u32 %v1038_v50, %v899_v49  ;;  %v901_v53 = vld [vmem:[#allocation8 + $0x48] sm:$0xf0]  ;;  %v1050_v56 = vld [vmem:[#allocation8 + $0xa4] sm:$0xf0] }
  0x3a   :  { %v1049_v57 = vld [vmem:[#allocation8 + $0xa4] sm:$0xf]  ;;  %v891_v61 = vld [vmem:[#allocation8 + $0x30] sm:$0xf]  ;;  %v1036_v62 = vld [vmem:[#allocation8 + $0x34] sm:$0xf0] }
  0x3b   :  { %v939_v3 = vld [vmem:[#allocation8 + $0x90] sm:$0xf]  ;;  %v1048_v4 = vld [vmem:[#allocation8 + $0x94] sm:$0xf0]  ;;  %v1047_v5 = vld [vmem:[#allocation8 + $0x94] sm:$0xf] }
  0x3c   :  { %402 = vmatpush.bf16.msrb.mxu0 %v744_v44  ;;  %627 = vmatpush.bf16.msrb.mxu2 %v924_v0  ;;  %v1052_v44 = vld [vmem:[#allocation8 + $0xb4] sm:$0xf0]  ;;  %v892_v0 = vor.u32 %v1036_v62, %v891_v61  ;;  %v940_v6 = vor.u32 %v1048_v4, %v939_v3  ;;  %v941_v7 = vld [vmem:[#allocation8 + $0x98] sm:$0xf0]  ;;  %v883_v9 = vld [vmem:[#allocation8 + $0x20] sm:$0xf] }
  0x3d   :  { %416 = vmatpush.bf16.msrb.mxu1 %v808_v47  ;;  %641 = vmatpush.bf16.msrb.mxu3 %v988_v51  ;;  %v956_v46 = vor.u32 %v1052_v44, %v955_v43  ;;  %v957_v47 = vld [vmem:[#allocation8 + $0xb8] sm:$0xf0]  ;;  %v1037_v51 = vld [vmem:[#allocation8 + $0x44] sm:$0xf]  ;;  %v1034_v10 = vld [vmem:[#allocation8 + $0x24] sm:$0xf0] }
  0x3e   :  { %v960_v48 = vor.u32 %v1051_v45, %v957_v47  ;;  %v904_v54 = vor.u32 %v1037_v51, %v901_v53  ;;  %v931_v15 = vld [vmem:[#allocation8 + $0x80] sm:$0xf]  ;;  %v1046_v16 = vld [vmem:[#allocation8 + $0x84] sm:$0xf0]  ;;  %v1045_v17 = vld [vmem:[#allocation8 + $0x84] sm:$0xf] }
  0x40   :  { %655 = vmatpush.bf16.msra.mxu0 %v928_v1  ;;  %628 = vmatpush.bf16.msrb.mxu2 %v916_v8  ;;  %v893_v1 = vld [vmem:[#allocation8 + $0x38] sm:$0xf0]  ;;  %v944_v8 = vor.u32 %v1047_v5, %v941_v7 }
  0x41   :  { %669 = vmatpush.bf16.msra.mxu1 %v992_v55  ;;  %642 = vmatpush.bf16.msrb.mxu3 %v980_v59  ;;  %v947_v55 = vld [vmem:[#allocation8 + $0xa0] sm:$0xf]  ;;  %v949_v59 = vld [vmem:[#allocation8 + $0xa8] sm:$0xf0] }
  0x42   :  { %v948_v58 = vor.u32 %v1050_v56, %v947_v55  ;;  %v952_v60 = vor.u32 %v1049_v57, %v949_v59 }
  0x44   :  { %656 = vmatpush.bf16.msra.mxu0 %v920_v12  ;;  %629 = vmatpush.bf16.msrb.mxu2 %v908_v40  ;;  %v884_v12 = vor.u32 %v1034_v10, %v883_v9 }
  0x45   :  { %670 = vmatpush.bf16.msra.mxu1 %v984_v63  ;;  %643 = vmatpush.bf16.msrb.mxu3 %v972_v11  ;;  %v1035_v63 = vld [vmem:[#allocation8 + $0x34] sm:$0xf]  ;;  %v1033_v11 = vld [vmem:[#allocation8 + $0x24] sm:$0xf] }
  0x46   :  { %v896_v2 = vor.u32 %v1035_v63, %v893_v1  ;;  %v687_v1 = vld [vmem:[%s1268_s7] sm:$0x3] }
  0x47   :  { %v689_v10 = vperm.slane %v687_v1, 0 }
  0x48   :  { %657 = vmatpush.bf16.msra.mxu0 %v912_v42  ;;  %630 = vmatpush.bf16.msrb.mxu2 %v900_v52 }
  0x49   :  { %671 = vmatpush.bf16.msra.mxu1 %v976_v13  ;;  %644 = vmatpush.bf16.msrb.mxu3 %v964_v18  ;;  %v885_v13 = vld [vmem:[#allocation8 + $0x28] sm:$0xf0]  ;;  %v932_v18 = vor.u32 %v1046_v16, %v931_v15 }
  0x4a   :  { %v888_v14 = vor.u32 %v1033_v11, %v885_v13 }
  0x4c   :  { %658 = vmatpush.bf16.msra.mxu0 %v904_v54  ;;  %631 = vmatpush.bf16.msrb.mxu2 %v892_v0 }
  0x4d   :  { %672 = vmatpush.bf16.msra.mxu1 %v968_v19  ;;  %645 = vmatpush.bf16.msrb.mxu3 %v956_v46  ;;  %v933_v19 = vld [vmem:[#allocation8 + $0x88] sm:$0xf0] }
  0x4e   :  { %v936_v20 = vor.u32 %v1045_v17, %v933_v19 }
  0x50   :  { %659 = vmatpush.bf16.msra.mxu0 %v896_v2  ;;  %632 = vmatpush.bf16.msrb.mxu2 %v884_v12 }
  0x51   :  { %673 = vmatpush.bf16.msra.mxu1 %v960_v48  ;;  %646 = vmatpush.bf16.msrb.mxu3 %v948_v58  ;;  %v461_v58 = vld [vmem:[%s1267_s6] sm:$0x3] }
  0x52   :  { %v464_v59 = vperm.slane %v461_v58, 1  ;;  %v463_v63 = vperm.slane %v461_v58, 0 }
  0x54   :  { %660 = vmatpush.bf16.msra.mxu0 %v888_v14 }
  0x55   :  { %674 = vmatpush.bf16.msra.mxu1 %v952_v60  ;;  %647 = vmatpush.bf16.msrb.mxu3 %v940_v6  ;;  %v690_v6 = vperm.slane %v687_v1, 1 }
  0x59   :  { %675 = vmatpush.bf16.msra.mxu1 %v944_v8  ;;  %648 = vmatpush.bf16.msrb.mxu3 %v932_v18 }
  0x5d   :  { %676 = vmatpush.bf16.msra.mxu1 %v936_v20 }
  0x9c   :  { %v144_v21 = vpop.f32.mrf.mxu0 }
  0x9d   :  { %v145_v25 = vadd.f32 %v144_v21, %v107_v23  ;;  %v875_v21 = vld [vmem:[#allocation8 + $0x10] sm:$0xf] }
  0x9f   :  { %v158_v22 = vpop.f32.mrf.mxu1  ;;  %v163_v31 = vmax.f32 %v145_v25, 0.0  ;;  %v877_v25 = vld [vmem:[#allocation8 + $0x18] sm:$0xf0] }
  0xa0   :  { %v159_v26 = vadd.f32 %v158_v22, %v108_v24  ;;  %v1032_v22 = vld [vmem:[#allocation8 + $0x14] sm:$0xf0] }
  0xa2   :  { %v164_v33 = vmax.f32 %v159_v26, 0.0 }
  0xa4   :  { %v146_v27 = vpop.f32.mrf.mxu0 }
  0xa5   :  { %v147_v28 = vadd.f32 %v146_v27, %v107_v23  ;;  %v1031_v23 = vld [vmem:[#allocation8 + $0x14] sm:$0xf]  ;;  %v867_v27 = vld [vmem:[#allocation8] sm:$0xf] }
  0xa6   :  { %v880_v26 = vor.u32 %v1031_v23, %v877_v25 }
  0xa7   :  { %v160_v29 = vpop.f32.mrf.mxu1  ;;  %v165_v32 = vmax.f32 %v147_v28, 0.0  ;;  %v1030_v28 = vld [vmem:[#allocation8 + $0x4] sm:$0xf0] }
  0xa8   :  { %v161_v30 = vadd.f32 %v160_v29, %v108_v24  ;;  %v876_v24 = vor.u32 %v1032_v22, %v875_v21  ;;  %661 = vmatpush.bf16.msra.mxu0 %v880_v26  ;;  %v1029_v29 = vld [vmem:[#allocation8 + $0x4] sm:$0xf]  ;;  %v1067_v26 = vld [vmem:[#allocation2] ss:$0 sm:$0xff] }
  0xa9   :  { %v167_v35 = vpack.c.bf16 %v165_v32, %v163_v31  ;;  %v869_v31 = vld [vmem:[#allocation8 + $0x8] sm:$0xf0] }
  0xaa   :  { %v166_v34 = vmax.f32 %v161_v30, 0.0  ;;  %633 = vmatpush.bf16.msrb.mxu2 %v876_v24  ;;  %v868_v30 = vor.u32 %v1030_v28, %v867_v27  ;;  %v872_v32 = vor.u32 %v1029_v29, %v869_v31 }
  0xab   :  { %375 = vmatmul.bf16.vlgmr.msra.gmra.mxu2 %v167_v35  ;;  %403 = vmatmul.bf16.vlgmr.msrb.gmra.mxu0 %v167_v35 }
  0xac   :  { %v168_v36 = vpack.c.bf16 %v166_v34, %v164_v33  ;;  %662 = vmatpush.bf16.msra.mxu0 %v872_v32  ;;  %v201_v33 = vld [vmem:[%s1265_s4] sm:$0x3] }
  0xad   :  { %v204_v35 = vperm.slane %v201_v33, 1  ;;  %v203_v39 = vperm.slane %v201_v33, 0 }
  0xae   :  { %389 = vmatmul.bf16.vlgmr.msra.gmra.mxu3 %v168_v36  ;;  %417 = vmatmul.bf16.vlgmr.msrb.gmra.mxu1 %v168_v36 }
  0xaf   :  { %634 = vmatpush.bf16.msrb.mxu2 %v868_v30 }
 0x128   :  { %v404_v34 = vpop.f32.mrf.mxu0 }
 0x129   :  { %v405_v37 = vadd.f32 %v404_v34, %v204_v35 }
 0x12b   :  { %v418_v36 = vpop.f32.mrf.mxu1 }
 0x12c   :  { %v419_v42 = vadd.f32 %v418_v36, %v405_v37 }
 0x12e   :  { %v376_v38 = vpop.f32.mrf.mxu2  ;;  %v424_v47 = vmax.f32 %v419_v42, 0.0 }
 0x12f   :  { %v377_v45 = vadd.f32 %v376_v38, %v203_v39 }
 0x130   :  { %v406_v41 = vpop.f32.mrf.mxu0 }
 0x131   :  { %v390_v40 = vpop.f32.mrf.mxu3  ;;  %v407_v43 = vadd.f32 %v406_v41, %v204_v35 }
 0x132   :  { %v391_v50 = vadd.f32 %v390_v40, %v377_v45 }
 0x133   :  { %v420_v44 = vpop.f32.mrf.mxu1 }
 0x134   :  { %v421_v46 = vadd.f32 %v420_v44, %v407_v43  ;;  %v423_v55 = vmax.f32 %v391_v50, 0.0 }
 0x136   :  { %v426_v48 = vmax.f32 %v421_v46, 0.0  ;;  %v378_v49 = vpop.f32.mrf.mxu2 }
 0x137   :  { %v379_v52 = vadd.f32 %v378_v49, %v203_v39 }
 0x138   :  { %v428_v51 = vpack.c.bf16 %v426_v48, %v424_v47 }
 0x139   :  { %v392_v53 = vpop.f32.mrf.mxu3 }
 0x13a   :  { %v393_v54 = vadd.f32 %v392_v53, %v379_v52  ;;  %649 = vmatmul.bf16.vlgmr.msrb.gmra.mxu3 %v428_v51  ;;  %677 = vmatmul.bf16.vlgmr.msra.gmra.mxu1 %v428_v51 }
 0x13c   :  { %v425_v56 = vmax.f32 %v393_v54, 0.0 }
 0x13e   :  { %v427_v57 = vpack.c.bf16 %v425_v56, %v423_v55 }
 0x140   :  { %635 = vmatmul.bf16.vlgmr.msrb.gmra.mxu2 %v427_v57  ;;  %663 = vmatmul.bf16.vlgmr.msra.gmra.mxu0 %v427_v57 }
 0x1b7   :  { %v678_v62 = vpop.f32.mrf.mxu1 }
 0x1bd   :  { %v664_v60 = vpop.f32.mrf.mxu0  ;;  %v650_v2 = vpop.f32.mrf.mxu3 }
 0x1be   :  { %v665_v61 = vadd.f32 %v664_v60, %v464_v59 }
 0x1bf   :  { %v680_v12 = vpop.f32.mrf.mxu1 }
 0x1c0   :  { %v679_v0 = vadd.f32 %v678_v62, %v665_v61 }
 0x1c2   :  { %v684_v7 = vmax.f32 %v679_v0, 0.0 }
 0x1c3   :  { %v636_v3 = vpop.f32.mrf.mxu2 }
 0x1c4   :  { %v637_v4 = vadd.f32 %v636_v3, %v463_v63  ;;  %v694_v15 = vmul.f32 %v690_v6, %v684_v7 }
 0x1c5   :  { %v666_v5 = vpop.f32.mrf.mxu0  ;;  %v652_v19 = vpop.f32.mrf.mxu3 }
 0x1c6   :  { %v651_v8 = vadd.f32 %v650_v2, %v637_v4  ;;  %v667_v9 = vadd.f32 %v666_v5, %v464_v59 }
 0x1c8   :  { %v683_v11 = vmax.f32 %v651_v8, 0.0  ;;  %v681_v13 = vadd.f32 %v680_v12, %v667_v9 }
 0x1ca   :  { %v693_v14 = vmul.f32 %v689_v10, %v683_v11  ;;  %v686_v20 = vmax.f32 %v681_v13, 0.0 }
 0x1cb   :  { %v638_v16 = vpop.f32.mrf.mxu2 }
 0x1cc   :  { %v639_v17 = vadd.f32 %v638_v16, %v463_v63  ;;  %v697_v18 = vadd.f32 %v694_v15, %v693_v14  ;;  %v696_v24 = vmul.f32 %v690_v6, %v686_v20 }
 0x1ce   :  { %v653_v21 = vadd.f32 %v652_v19, %v639_v17  ;;  %698 = vadd.xlane.f32.xlu0 %v697_v18 }
 0x1d0   :  { %v685_v22 = vmax.f32 %v653_v21, 0.0 }
 0x1d2   :  { %v695_v23 = vmul.f32 %v689_v10, %v685_v22 }
 0x1d4   :  { %v700_v25 = vadd.f32 %v696_v24, %v695_v23 }
 0x1d6   :  { %701 = vadd.xlane.f32.xlu0 %v700_v25 }
 0x241   :  { %v699_v27 = vpop.xlane.xlu0 %698 }
 0x242   :  { %v707_v28 = vadd.f32 %v1067_v26, %v699_v27 }
 0x244   :  { %710 = vst.msk [vmem:[%s1270_s9] sm:$0xff] %vm709_vm1, %v707_v28 }
 0x249   :  { %v702_v29 = vpop.xlane.xlu0 %701 }
 0x24a   :  { %v708_v30 = vadd.f32 %v1067_v26, %v702_v29 }
 0x24c   :  { %711 = vst.msk [vmem:[%s1270_s9 + $0x8] sm:$0xff] %vm709_vm1, %v708_v30 }
 0x24d   :  { %716 = vsyncpa [#allocation4], 1 }
 0x24e   :  { %717 = vsyncpa [#allocation6], 1 }
 0x24f   :  { %718 = vsyncpa [#allocation9], 1 }

</bundles_post_ra>
